<compile_context>
chip_gen: v5e
topology: v5e:2x2
jax: 0.10.0
libtpu: 0.0.40
codegen_flags: <defaults>
</compile_context>

<pallas_src>
import jax
import jax.numpy as jnp
from jax import lax
from jax.experimental import pallas as pl
from jax.experimental.pallas import tpu as pltpu


def _round_up(x, m):
    return ((x + m - 1) // m) * m


def _pick_tile(dim, cap, align):
    """Tile size for a padded dim: the full dim if it fits under `cap`,
    otherwise the largest multiple of `align` <= cap that divides `dim`."""
    if dim <= cap:
        return dim
    best = align
    t = align
    while t <= cap:
        if dim % t == 0:
            best = t
        t += align
    return best


def _pad2d(arr, rows, cols):
    """Zero-pad to (rows, cols); no-op (no HBM copy) if already that shape."""
    r, c = arr.shape
    if r == rows and c == cols:
        return arr
    return jnp.zeros((rows, cols), arr.dtype).at[:r, :c].set(arr)


def _linear_kernel(x_ref, w_ref, b_ref, o_ref, acc_ref):
    """o = x @ w.T + b  (w stored as (out, in); contraction over last dims)."""

    @pl.when(pl.program_id(2) == 0)
    def _():
        acc_ref[...] = jnp.zeros_like(acc_ref)

    acc_ref[...] += lax.dot_general(
        x_ref[...], w_ref[...],
        dimension_numbers=(((1,), (1,)), ((), ())),   # trans_b, no W.T copy
        preferred_element_type=jnp.float32)

    @pl.when(pl.program_id(2) == pl.num_programs(2) - 1)
    def _():
        o_ref[...] = (acc_ref[...] +
                      b_ref[...].astype(jnp.float32)).astype(o_ref.dtype)


def _matmul_kernel(a_ref, h_ref, o_ref):
    """o = a @ h, accumulating directly into the resident f32 output block."""

    @pl.when(pl.program_id(2) == 0)
    def _():
        o_ref[...] = jnp.zeros_like(o_ref)

    o_ref[...] += jnp.dot(a_ref[...], h_ref[...],
                          preferred_element_type=jnp.float32)


def gcn_conv_dense_forward(x, A, W, b, *,
                           node_tile_cap=512,
                           feat_tile_cap=512,
                           compute_dtype=jnp.bfloat16,
                           vmem_limit_bytes=32 * 1024 * 1024):
    """GCNConv_dense.forward:  A @ (x @ W.T + b).

    x: (M, K) node features, A: (M, M) dense adjacency,
    W: (N, K) nn.Linear weight (out, in), b: (N,) bias.
    """
    M, K = x.shape
    N, K2 = W.shape
    assert K == K2 and A.shape == (M, M) and b.shape == (N,)

    # Padded extents: a dim is only padded when it actually needs tiling
    # (dim > cap); a single full-extent block has no (8,128) requirement.
    Mp = M if M <= node_tile_cap else _round_up(M, 128)
    Kp = K if K <= feat_tile_cap else _round_up(K, 128)
    Np = N if N <= feat_tile_cap else _round_up(N, 128)

    tm = _pick_tile(Mp, node_tile_cap, 8)      # node rows (x, A, outputs)
    tk1 = _pick_tile(Kp, feat_tile_cap, 128)   # input_size contraction
    tn = _pick_tile(Np, feat_tile_cap, 128)    # output_size (lane dim)
    tk2 = _pick_tile(Mp, node_tile_cap, 128)   # node contraction of A @ hidden

    # bf16 operands for the MXU (f32 accumulation inside the kernels).
    xd = x.astype(compute_dtype)
    Wd = W.astype(compute_dtype)
    Ad = A.astype(compute_dtype)
    bd = b.astype(jnp.float32)

    x_p = _pad2d(xd, Mp, Kp)
    W_p = _pad2d(Wd, Np, Kp)
    A_p = _pad2d(Ad, Mp, Mp)   # zero cols cancel bias in hidden's padded rows
    b_p = bd if Np == N else jnp.zeros((Np,), bd.dtype).at[:N].set(bd)
    b_p = b_p.reshape(1, Np)

    cparams = pltpu.CompilerParams(
        dimension_semantics=("parallel", "parallel", "arbitrary"),
        vmem_limit_bytes=vmem_limit_bytes,
    )

    # ---- call 1: hidden = x @ W.T + b  (bf16 output, f32 accumulator) ----
    grid1 = (Mp // tm, Np // tn, Kp // tk1)
    hidden_p = pl.pallas_call(
        _linear_kernel,
        out_shape=jax.ShapeDtypeStruct((Mp, Np), compute_dtype),
        grid_spec=pltpu.PrefetchScalarGridSpec(
            num_scalar_prefetch=0,
            grid=grid1,
            in_specs=[
                pl.BlockSpec((tm, tk1), lambda i, j, k: (i, k)),   # x tile
                pl.BlockSpec((tn, tk1), lambda i, j, k: (j, k)),   # W tile (trans_b)
                pl.BlockSpec((1, tn), lambda i, j, k: (0, j)),     # bias row
            ],
            out_specs=pl.BlockSpec((tm, tn), lambda i, j, k: (i, j)),
            scratch_shapes=[pltpu.VMEM((tm, tn), jnp.float32)],
        ),
        compiler_params=cparams,
    )(x_p, W_p, b_p)

    # ---- call 2: out = A @ hidden  (no bias, accumulate into f32 output) ----
    grid2 = (Mp // tm, Np // tn, Mp // tk2)
    out_p = pl.pallas_call(
        _matmul_kernel,
        out_shape=jax.ShapeDtypeStruct((Mp, Np), jnp.float32),
        grid_spec=pltpu.PrefetchScalarGridSpec(
            num_scalar_prefetch=0,
            grid=grid2,
            in_specs=[
                pl.BlockSpec((tm, tk2), lambda i, j, k: (i, k)),   # A tile
                pl.BlockSpec((tk2, tn), lambda i, j, k: (k, j)),   # hidden tile
            ],
            out_specs=pl.BlockSpec((tm, tn), lambda i, j, k: (i, j)),
        ),
        compiler_params=cparams,
    )(A_p, hidden_p)

    if Mp == M and Np == N:
        return out_p
    return out_p[:M, :N]


if __name__ == "__main__":
    key = jax.random.PRNGKey(0)
    k1, k2, k3, k4 = jax.random.split(key, 4)

    # Small shapes consistent with the module: nodes=8, input_size=32, output_size=16.
    num_nodes, input_size, output_size = 8, 32, 16
    x = jax.random.normal(k1, (num_nodes, input_size), dtype=jnp.float32)
    A = jax.random.normal(k2, (num_nodes, num_nodes), dtype=jnp.float32)
    # nn.Linear parameters (weight: (out, in), bias: (out,)).
    W = jax.random.normal(k3, (output_size, input_size), dtype=jnp.float32) * 0.1
    b = jax.random.normal(k4, (output_size,), dtype=jnp.float32) * 0.1

    fwd = jax.jit(gcn_conv_dense_forward)
    out = fwd(x, A, W, b)
    out = jax.block_until_ready(out)

    # Reference with the same bf16 input rounding the kernel performs
    # (f32 accumulation, hidden rounded to bf16 between the two matmuls).
    xb = x.astype(jnp.bfloat16).astype(jnp.float32)
    Wb = W.astype(jnp.bfloat16).astype(jnp.float32)
    Ab = A.astype(jnp.bfloat16).astype(jnp.float32)
    hidden_ref = jnp.matmul(xb, Wb.T, precision=jax.lax.Precision.HIGHEST) + b
    hidden_ref = hidden_ref.astype(jnp.bfloat16).astype(jnp.float32)
    ref = jnp.matmul(Ab, hidden_ref, precision=jax.lax.Precision.HIGHEST)

    assert out.shape == ref.shape == (num_nodes, output_size)
    assert out.dtype == jnp.float32
    assert jnp.allclose(out, ref, atol=1e-2, rtol=1e-2), "mismatch vs reference"

    print("KERNEL_OK")
</pallas_src>

<mosaic_0001>
module attributes {stable_mosaic.version = 11 : i64} {
  func.func @_linear_kernel(%arg0: i32, %arg1: i32, %arg2: i32, %arg3: memref<8x32xbf16, #tpu.memory_space<vmem>>, %arg4: memref<16x32xbf16, #tpu.memory_space<vmem>>, %arg5: memref<1x16xf32, #tpu.memory_space<vmem>>, %arg6: memref<8x16xbf16, #tpu.memory_space<vmem>>, %arg7: memref<8x16xf32, #tpu.memory_space<vmem>>) attributes {dimension_semantics = [#tpu.dimension_semantics<parallel>, #tpu.dimension_semantics<parallel>, #tpu.dimension_semantics<arbitrary>], iteration_bounds = array<i64: 1, 1, 1>, scalar_prefetch = 0 : i64, scratch_operands = 1 : i64, tpu.core_type = #tpu.core_type<tc>, window_params = [{transform_indices = @transform_0, window_bounds = array<i64: 8, 32>}, {transform_indices = @transform_1, window_bounds = array<i64: 16, 32>}, {transform_indices = @transform_2, window_bounds = array<i64: 1, 16>}, {transform_indices = @transform_3, window_bounds = array<i64: 8, 16>}]} {
    %c0_i32 = arith.constant 0 : i32
    %0 = arith.cmpi eq, %arg2, %c0_i32 : i32
    %1 = arith.extui %0 : i1 to i32
    %c0_i32_0 = arith.constant 0 : i32
    %2 = arith.cmpi ne, %1, %c0_i32_0 : i32
    scf.if %2 {
      %cst_10 = arith.constant 0.000000e+00 : f32
      %12 = vector.broadcast %cst_10 : f32 to vector<8x16xf32>
      %c0_11 = arith.constant 0 : index
      %c0_12 = arith.constant 0 : index
      %13 = vector.load %arg7[%c0_11, %c0_12] : memref<8x16xf32, #tpu.memory_space<vmem>>, vector<8x16xf32>
      tpu.vector_store %arg7[%c0_11, %c0_12], %12 {strides = array<i32>} : memref<8x16xf32, #tpu.memory_space<vmem>>, vector<8x16xf32>,
    } else {
    }
    %c0 = arith.constant 0 : index
    %c0_1 = arith.constant 0 : index
    %3 = vector.load %arg7[%c0, %c0_1] : memref<8x16xf32, #tpu.memory_space<vmem>>, vector<8x16xf32>
    %c0_2 = arith.constant 0 : index
    %c0_3 = arith.constant 0 : index
    %4 = vector.load %arg3[%c0_2, %c0_3] : memref<8x32xbf16, #tpu.memory_space<vmem>>, vector<8x32xbf16>
    %c0_4 = arith.constant 0 : index
    %c0_5 = arith.constant 0 : index
    %5 = vector.load %arg4[%c0_4, %c0_5] : memref<16x32xbf16, #tpu.memory_space<vmem>>, vector<16x32xbf16>
    %cst = arith.constant dense<0.000000e+00> : vector<8x16xf32>
    %6 = tpu.matmul %4, %5, %cst {dimension_numbers = #tpu.dot_dimension_numbers<[1], [1], [0], [0], [0, 0, 1, 0], [], []>} : vector<8x32xbf16>, vector<16x32xbf16>, vector<8x16xf32> -> vector<8x16xf32>
    %7 = arith.addf %3, %6 : vector<8x16xf32>
    %c0_6 = arith.constant 0 : index
    %c0_7 = arith.constant 0 : index
    %8 = vector.load %arg7[%c0_6, %c0_7] : memref<8x16xf32, #tpu.memory_space<vmem>>, vector<8x16xf32>
    tpu.vector_store %arg7[%c0_6, %c0_7], %7 {strides = array<i32>} : memref<8x16xf32, #tpu.memory_space<vmem>>, vector<8x16xf32>,
    %c0_i32_8 = arith.constant 0 : i32
    %9 = arith.cmpi eq, %arg2, %c0_i32_8 : i32
    %10 = arith.extui %9 : i1 to i32
    %c0_i32_9 = arith.constant 0 : i32
    %11 = arith.cmpi ne, %10, %c0_i32_9 : i32
    scf.if %11 {
      %c0_10 = arith.constant 0 : index
      %c0_11 = arith.constant 0 : index
      %12 = vector.load %arg7[%c0_10, %c0_11] : memref<8x16xf32, #tpu.memory_space<vmem>>, vector<8x16xf32>
      %c0_12 = arith.constant 0 : index
      %c0_13 = arith.constant 0 : index
      %13 = vector.load %arg5[%c0_12, %c0_13] : memref<1x16xf32, #tpu.memory_space<vmem>>, vector<1x16xf32>
      %14 = vector.broadcast %13 : vector<1x16xf32> to vector<8x16xf32>
      %15 = arith.addf %12, %14 : vector<8x16xf32>
      %16 = arith.truncf %15 : vector<8x16xf32> to vector<8x16xbf16>
      %c0_14 = arith.constant 0 : index
      %c0_15 = arith.constant 0 : index
      %17 = vector.load %arg6[%c0_14, %c0_15] : memref<8x16xbf16, #tpu.memory_space<vmem>>, vector<8x16xbf16>
      tpu.vector_store %arg6[%c0_14, %c0_15], %16 {strides = array<i32>} : memref<8x16xbf16, #tpu.memory_space<vmem>>, vector<8x16xbf16>,
    } else {
    }
    return
  }
  func.func @transform_0(%arg0: i32, %arg1: i32, %arg2: i32) -> (i32, i32) {
    %c0_i32 = arith.constant 0 : i32
    return %arg0, %arg2 : i32, i32
  }
  func.func @transform_1(%arg0: i32, %arg1: i32, %arg2: i32) -> (i32, i32) {
    %c0_i32 = arith.constant 0 : i32
    return %arg1, %arg2 : i32, i32
  }
  func.func @transform_2(%arg0: i32, %arg1: i32, %arg2: i32) -> (i32, i32) {
    %c0_i32 = arith.constant 0 : i32
    %c0_i32_0 = arith.constant 0 : i32
    return %c0_i32, %arg1 : i32, i32
  }
  func.func @transform_3(%arg0: i32, %arg1: i32, %arg2: i32) -> (i32, i32) {
    %c0_i32 = arith.constant 0 : i32
    return %arg0, %arg1 : i32, i32
  }
}

module attributes {stable_mosaic.version = 11 : i64} {
  func.func @_matmul_kernel(%arg0: i32, %arg1: i32, %arg2: i32, %arg3: memref<8x8xbf16, #tpu.memory_space<vmem>>, %arg4: memref<8x16xbf16, #tpu.memory_space<vmem>>, %arg5: memref<8x16xf32, #tpu.memory_space<vmem>>) attributes {dimension_semantics = [#tpu.dimension_semantics<parallel>, #tpu.dimension_semantics<parallel>, #tpu.dimension_semantics<arbitrary>], iteration_bounds = array<i64: 1, 1, 1>, scalar_prefetch = 0 : i64, scratch_operands = 0 : i64, tpu.core_type = #tpu.core_type<tc>, window_params = [{transform_indices = @transform_0, window_bounds = array<i64: 8, 8>}, {transform_indices = @transform_1, window_bounds = array<i64: 8, 16>}, {transform_indices = @transform_2, window_bounds = array<i64: 8, 16>}]} {
    %c0_i32 = arith.constant 0 : i32
    %0 = arith.cmpi eq, %arg2, %c0_i32 : i32
    %1 = arith.extui %0 : i1 to i32
    %c0_i32_0 = arith.constant 0 : i32
    %2 = arith.cmpi ne, %1, %c0_i32_0 : i32
    scf.if %2 {
      %cst_8 = arith.constant 0.000000e+00 : f32
      %9 = vector.broadcast %cst_8 : f32 to vector<8x16xf32>
      %c0_9 = arith.constant 0 : index
      %c0_10 = arith.constant 0 : index
      %10 = vector.load %arg5[%c0_9, %c0_10] : memref<8x16xf32, #tpu.memory_space<vmem>>, vector<8x16xf32>
      tpu.vector_store %arg5[%c0_9, %c0_10], %9 {strides = array<i32>} : memref<8x16xf32, #tpu.memory_space<vmem>>, vector<8x16xf32>,
    } else {
    }
    %c0 = arith.constant 0 : index
    %c0_1 = arith.constant 0 : index
    %3 = vector.load %arg5[%c0, %c0_1] : memref<8x16xf32, #tpu.memory_space<vmem>>, vector<8x16xf32>
    %c0_2 = arith.constant 0 : index
    %c0_3 = arith.constant 0 : index
    %4 = vector.load %arg3[%c0_2, %c0_3] : memref<8x8xbf16, #tpu.memory_space<vmem>>, vector<8x8xbf16>
    %c0_4 = arith.constant 0 : index
    %c0_5 = arith.constant 0 : index
    %5 = vector.load %arg4[%c0_4, %c0_5] : memref<8x16xbf16, #tpu.memory_space<vmem>>, vector<8x16xbf16>
    %cst = arith.constant dense<0.000000e+00> : vector<8x16xf32>
    %6 = tpu.matmul %4, %5, %cst {dimension_numbers = #tpu.dot_dimension_numbers<[1], [0], [0], [1], [0, 0, 1, 1], [], []>} : vector<8x8xbf16>, vector<8x16xbf16>, vector<8x16xf32> -> vector<8x16xf32>
    %7 = arith.addf %3, %6 : vector<8x16xf32>
    %c0_6 = arith.constant 0 : index
    %c0_7 = arith.constant 0 : index
    %8 = vector.load %arg5[%c0_6, %c0_7] : memref<8x16xf32, #tpu.memory_space<vmem>>, vector<8x16xf32>
    tpu.vector_store %arg5[%c0_6, %c0_7], %7 {strides = array<i32>} : memref<8x16xf32, #tpu.memory_space<vmem>>, vector<8x16xf32>,
    return
  }
  func.func @transform_0(%arg0: i32, %arg1: i32, %arg2: i32) -> (i32, i32) {
    %c0_i32 = arith.constant 0 : i32
    return %arg0, %arg2 : i32, i32
  }
  func.func @transform_1(%arg0: i32, %arg1: i32, %arg2: i32) -> (i32, i32) {
    %c0_i32 = arith.constant 0 : i32
    return %arg2, %arg1 : i32, i32
  }
  func.func @transform_2(%arg0: i32, %arg1: i32, %arg2: i32) -> (i32, i32) {
    %c0_i32 = arith.constant 0 : i32
    return %arg0, %arg1 : i32, i32
  }
}

</mosaic_0001>

<bundles_post_ra>
// kernel: gcn_conv_dense_forward.2
= control target key start
LH: loop header
LB: loop body
LE: loop exit
PB: predicated region body
PF: predicated region fallthrough
CT: control target
= control target key end

     0   :  { %vm30_vm0 = vcmask 261120   ;;  %vm19_vm1 = vcmask 130048   ;;  %v77_v1 = vmov 0.0   ;;  %vm63_vm2 = vcmask 125952   ;;  %s110_s1 = inlined_call_operand.vmem [shape: bf16[16,32], index: 1, kind: input, shape index: {}]   ;;  %s111_s2 = inlined_call_operand.vmem [shape: f32[1,16], index: 2, kind: input, shape index: {}]   ;;  %s112_s0 = inlined_call_operand.vmem [shape: bf16[8,32], index: 0, kind: input, shape index: {}]   ;;  %s113_s3 = inlined_call_operand.vmem [shape: bf16[8,16], index: 3, kind: output, shape index: {}]  }
   0x1   :  { %v74_v0 = vld [vmem:[%s110_s1] sm:$0xff]  ;;  %20 = vst.msk [vmem:[#allocation2] sm:$0xff] %vm19_vm1, %v77_v1 }
   0x2   :  { %v35_v2 = vsel %vm30_vm0, %v74_v0, 0  ;;  %v22_v3 = vld [vmem:[%s112_s0] sm:$0xf] }
   0x3   :  { %44 = vmatpush.bf16.xpose.msra.mxu0 %v35_v2  ;;  %v76_v7 = vld [vmem:[%s111_s2] ss:$0 sm:$0xff] }
   0x8   :  { %v21_v4 = vld [vmem:[#allocation2] sm:$0xff] }
   0xa   :  { %73 = vmatmul.msk.bf16.vlgmr.msra.gmra.mxu0 %vm30_vm0, %v22_v3 }
  0x87   :  { %v46_v5 = vpop.f32.mrf.mxu0 }
  0x88   :  { %v50_v6 = vadd.f32 %v46_v5, %v21_v4 }
  0x8a   :  { %52 = vst.msk [vmem:[#allocation2] sm:$0xff] %vm19_vm1, %v50_v6 }
  0x8f   :  { %v48_v8 = vpop.f32.mrf.mxu0 }
  0x91   :  { %v56_v9 = vld [vmem:[#allocation2] sm:$0xff] }
  0x92   :  { %v61_v10 = vadd.f32 %v76_v7, %v56_v9 }
  0x94   :  { %v62_v11 = vpack.c.bf16 %v61_v10, %v61_v10 }
  0x96   :  { %64 = vst.msk [vmem:[%s113_s3] sm:$0xf] %vm63_vm2, %v62_v11 }

// kernel: gcn_conv_dense_forward.3
= control target key start
LH: loop header
LB: loop body
LE: loop exit
PB: predicated region body
PF: predicated region fallthrough
CT: control target
= control target key end

     0   :  { %vm26_vm0 = vcmask 1043456   ;;  %vm17_vm1 = vcmask 130048   ;;  %s119_s0 = inlined_call_operand.vmem [shape: bf16[8,8], index: 0, kind: input, shape index: {}]   ;;  %s120_s1 = inlined_call_operand.vmem [shape: bf16[8,16], index: 1, kind: input, shape index: {}]   ;;  %s121_s2 = inlined_call_operand.hbm [shape: f32[8,16], index: 2, kind: output, shape index: {}]  }
   0x1   :  { %v21_v0 = vld [vmem:[%s120_s1] sm:$0xf] }
   0x2   :  { %v28_v1 = vsel %vm26_vm0, %v21_v0, 0 }
   0x3   :  { %7 = vsyncpa [#allocation3], 0  ;;  %37 = vmatpush.bf16.msra.mxu0 %v28_v1  ;;  %v20_v2 = vld [vmem:[%s119_s0] sm:$0xf]  ;;  %vm22_vm2 = vcmask 64512   ;;  %v91_v3 = vmov 0.0  }
   0x4   :  { %18 = vst.msk [vmem:[#allocation2] sm:$0xff] %vm17_vm1, %v91_v3  ;;  %s92_s13 = smov [#allocation2]   ;;  %s53_s1 = sshll.u32 %s121_s2, 4  ;;  %s54_s1 = int_to_ptr.hbm [resolvable:$true] %s53_s1 }
   0x5   :  { %s51_s14 = sshll.u32 %s92_s13, 4  ;;  %s52_s14 = int_to_ptr.vmem [resolvable:$true] %s51_s14 }
   0x6   :  { %62 = vmatmul.msk.bf16.vlgmr.msra.gmra.mxu0 %vm22_vm2, %v20_v2 }
   0xb   :  { %v19_v4 = vld [vmem:[#allocation2] sm:$0xff] }
  0x83   :  { %v39_v5 = vpop.f32.mrf.mxu0 }
  0x84   :  { %v43_v6 = vadd.f32 %v39_v5, %v19_v4 }
  0x86   :  { %45 = vst.msk [vmem:[#allocation2] sm:$0xff] %vm17_vm1, %v43_v6 }
  0x87   :  { %56 = dma.vmem_to_hbm [thread:$0]  %s52_s14, 128, %s54_s1, [#allocation3]  }
  0x8b   :  { %v41_v7 = vpop.f32.mrf.mxu0 }
  0x8c   :  { %89 = dma.done.wait [#allocation3], 128  }
  0x8d   :  { %90 = vsyncadd [#allocation3], 4294967168 }
  0x8e   :  { %61 = vsyncpa [#allocation3], 1 }

</bundles_post_ra>
